<compile_context>
chip_gen: v7x
topology: tpu7x:2x2x1
jax: 0.10.0
libtpu: 0.0.40
codegen_flags: <defaults>
</compile_context>

<pallas_src>
import functools

import jax
import jax.numpy as jnp
from jax.experimental import pallas as pl
from jax.experimental.pallas import tpu as pltpu


def _temporal_attention_kernel(x_ref, w_ref, b_ref, o_ref, *, scale):
    # x_ref : (bb, T, K)  VMEM, native dtype, K = S*F
    # w_ref : (K, H)      VMEM  (spatial-mean folded Linear weight)
    # b_ref : (1, H)      VMEM  (Linear bias, f32)
    # o_ref : (bb, K)     VMEM
    bb, T, K = x_ref.shape
    H = w_ref.shape[1]

    x = x_ref[...]                                     # (bb, T, K), native dtype

    # --- fused spatial-mean + Linear(F->H) + ReLU: one MXU matmul ---------
    x2d = x.reshape(bb * T, K)                         # (bb*T, K)
    h = jnp.dot(x2d, w_ref[...],
                preferred_element_type=jnp.float32) + b_ref[...]
    h = jnp.maximum(h, 0.0)                            # (bb*T, H), f32

    # --- per-time-step score: sum over H * (1-lambda_t)/H (folded) --------
    scores = jnp.sum(h.reshape(bb, T, H), axis=-1) * scale   # (bb, T)

    # --- softmax over the time axis (EUP approx reciprocal for the denom) -
    m = jnp.max(scores, axis=-1, keepdims=True)
    e = jnp.exp(scores - m)
    attn = e * pl.reciprocal(jnp.sum(e, axis=-1, keepdims=True), approx=True)

    # --- weighted sum over T as a single batched contraction --------------
    attn3 = attn.astype(x.dtype).reshape(bb, 1, T)     # (bb, 1, T)
    out = jnp.einsum("bqt,btk->bqk", attn3, x,
                     preferred_element_type=jnp.float32)     # (bb, 1, K)

    o_ref[...] = out.reshape(bb, K).astype(o_ref.dtype)


def temporal_attention(x, weight, bias, *, lambda_t=0.1, block_b=None):
    """x: (B,T,S,F); weight: (H,F) (PyTorch nn.Linear layout); bias: (H,)."""
    B, T, S, Fd = x.shape
    H = weight.shape[0]
    K = S * Fd

    # Lane-dense layout: flatten (S, F) into the minor axis.
    x_flat = x.reshape(B, T, K)                        # (B, T, K)

    # Fold the spatial mean into the Linear weight: W_rep[s*F+f, h] = W[h,f]/S.
    w_rep = (jnp.tile(weight.T, (S, 1)) / S).astype(x.dtype)   # (K, H)
    b2 = bias.reshape(1, H).astype(jnp.float32)                # (1, H)

    # Batch blocking: one block at toy sizes, 8-row blocks otherwise (keeps
    # the second-to-last output block dim a multiple of 8).
    if block_b is None:
        block_b = B if B <= 8 else 8
    if B % block_b != 0:
        block_b = B
    grid = (B // block_b,)

    scale = (1.0 - lambda_t) / H
    kernel = functools.partial(_temporal_attention_kernel, scale=scale)

    out2d = pl.pallas_call(
        kernel,
        out_shape=jax.ShapeDtypeStruct((B, K), x.dtype),
        grid=grid,
        in_specs=[
            pl.BlockSpec((block_b, T, K), lambda i: (i, 0, 0)),
            pl.BlockSpec((K, H), lambda i: (0, 0)),
            pl.BlockSpec((1, H), lambda i: (0, 0)),
        ],
        out_specs=pl.BlockSpec((block_b, K), lambda i: (i, 0)),
        compiler_params=pltpu.CompilerParams(
            dimension_semantics=("parallel",),
            vmem_limit_bytes=32 * 1024 * 1024),
    )(x_flat, w_rep, b2)

    return out2d.reshape(B, 1, S, Fd)


def _reference(x, weight, bias, lambda_t=0.1):
    x_temp = x.mean(axis=2)                            # (B, T, F)
    scores = jax.nn.relu(x_temp @ weight.T + bias)     # (B, T, H)
    scores = scores.mean(axis=2) * (1.0 - lambda_t)    # (B, T)
    attn = jax.nn.softmax(scores, axis=1)              # (B, T)
    return (x * attn[:, :, None, None]).sum(axis=1, keepdims=True)


if __name__ == "__main__":
    B, T, S, Fd, H = 2, 8, 16, 3, 32          # feature_dim=3, hidden_dim=32
    lambda_t = 0.1

    key = jax.random.PRNGKey(0)
    kx, kw, kb = jax.random.split(key, 3)

    x = jax.random.normal(kx, (B, T, S, Fd), dtype=jnp.float32)

    # Deterministic synthetic init mimicking nn.Linear's U(-1/sqrt(F), 1/sqrt(F)).
    bound = 1.0 / (Fd ** 0.5)
    weight = jax.random.uniform(kw, (H, Fd), minval=-bound, maxval=bound,
                                dtype=jnp.float32)
    bias = jax.random.uniform(kb, (H,), minval=-bound, maxval=bound,
                              dtype=jnp.float32)

    out = temporal_attention(x, weight, bias, lambda_t=lambda_t)
    out = jax.block_until_ready(out)

    ref = _reference(x, weight, bias, lambda_t)
    assert out.shape == (B, 1, S, Fd), out.shape
    # Tolerance accounts for the approximate (EUP) softmax-denominator
    # reciprocal used inside the kernel.
    assert jnp.allclose(out, ref, atol=2e-3, rtol=2e-3), \
        float(jnp.max(jnp.abs(out - ref)))

    print("KERNEL_OK")
</pallas_src>

<mosaic_0001>
module attributes {stable_mosaic.version = 11 : i64} {
  func.func @_temporal_attention_kernel(%arg0: i32, %arg1: memref<2x8x48xf32, #tpu.memory_space<vmem>>, %arg2: memref<48x32xf32, #tpu.memory_space<vmem>>, %arg3: memref<1x32xf32, #tpu.memory_space<vmem>>, %arg4: memref<2x48xf32, #tpu.memory_space<vmem>>) attributes {dimension_semantics = [#tpu.dimension_semantics<parallel>], iteration_bounds = array<i64: 1>, scalar_prefetch = 0 : i64, scratch_operands = 0 : i64, tpu.core_type = #tpu.core_type<tc>, window_params = [{transform_indices = @transform_0, window_bounds = array<i64: 2, 8, 48>}, {pipeline_mode = #tpu.pipeline_mode<synchronous>, transform_indices = @transform_1, window_bounds = array<i64: 48, 32>}, {pipeline_mode = #tpu.pipeline_mode<synchronous>, transform_indices = @transform_2, window_bounds = array<i64: 1, 32>}, {transform_indices = @transform_3, window_bounds = array<i64: 2, 48>}]} {
    %c0 = arith.constant 0 : index
    %c0_0 = arith.constant 0 : index
    %c0_1 = arith.constant 0 : index
    %0 = vector.load %arg1[%c0, %c0_0, %c0_1] : memref<2x8x48xf32, #tpu.memory_space<vmem>>, vector<2x8x48xf32>
    %1 = vector.shape_cast %0 : vector<2x8x48xf32> to vector<16x48xf32>
    %c0_2 = arith.constant 0 : index
    %c0_3 = arith.constant 0 : index
    %2 = vector.load %arg2[%c0_2, %c0_3] : memref<48x32xf32, #tpu.memory_space<vmem>>, vector<48x32xf32>
    %cst = arith.constant dense<0.000000e+00> : vector<16x32xf32>
    %3 = tpu.matmul %1, %2, %cst {dimension_numbers = #tpu.dot_dimension_numbers<[1], [0], [0], [1], [0, 0, 1, 1], [], []>} : vector<16x48xf32>, vector<48x32xf32>, vector<16x32xf32> -> vector<16x32xf32>
    %c0_4 = arith.constant 0 : index
    %c0_5 = arith.constant 0 : index
    %4 = vector.load %arg3[%c0_4, %c0_5] : memref<1x32xf32, #tpu.memory_space<vmem>>, vector<1x32xf32>
    %5 = vector.broadcast %4 : vector<1x32xf32> to vector<16x32xf32>
    %6 = arith.addf %3, %5 : vector<16x32xf32>
    %cst_6 = arith.constant 0.000000e+00 : f32
    %7 = vector.broadcast %cst_6 : f32 to vector<16x32xf32>
    %8 = arith.maximumf %6, %7 : vector<16x32xf32>
    %9 = vector.shape_cast %8 : vector<16x32xf32> to vector<2x8x32xf32>
    %cst_7 = arith.constant dense<0.000000e+00> : vector<2x8xf32>
    %10 = vector.multi_reduction <add>, %9, %cst_7 [2] : vector<2x8x32xf32> to vector<2x8xf32>
    %cst_8 = arith.constant 2.812500e-02 : f32
    %11 = vector.broadcast %cst_8 : f32 to vector<2x8xf32>
    %12 = arith.mulf %10, %11 : vector<2x8xf32>
    %cst_9 = arith.constant dense<0xFF800000> : vector<2xf32>
    %13 = vector.multi_reduction <maximumf>, %12, %cst_9 [1] : vector<2x8xf32> to vector<2xf32>
    %14 = vector.shape_cast %13 : vector<2xf32> to vector<2x1xf32>
    %15 = vector.broadcast %14 : vector<2x1xf32> to vector<2x8xf32>
    %16 = arith.subf %12, %15 : vector<2x8xf32>
    %17 = math.exp %16 : vector<2x8xf32>
    %cst_10 = arith.constant dense<0.000000e+00> : vector<2xf32>
    %18 = vector.multi_reduction <add>, %17, %cst_10 [1] : vector<2x8xf32> to vector<2xf32>
    %19 = vector.shape_cast %18 : vector<2xf32> to vector<2x1xf32>
    %20 = tpu.reciprocal %19 {approx = true} : vector<2x1xf32> -> vector<2x1xf32>
    %21 = vector.broadcast %20 : vector<2x1xf32> to vector<2x8xf32>
    %22 = arith.mulf %17, %21 : vector<2x8xf32>
    %23 = vector.shape_cast %22 : vector<2x8xf32> to vector<2x1x8xf32>
    "tpu.trace_start"() <{level = 10 : i32, message = "bqt,btk->bqk"}> : () -> ()
    %cst_11 = arith.constant dense<0.000000e+00> : vector<2x1x48xf32>
    %24 = tpu.matmul %23, %0, %cst_11 {dimension_numbers = #tpu.dot_dimension_numbers<[2], [1], [1], [2], [0, 0, 0, 1, 1, 2], [0], [0]>} : vector<2x1x8xf32>, vector<2x8x48xf32>, vector<2x1x48xf32> -> vector<2x1x48xf32>
    "tpu.trace_stop"() : () -> ()
    %25 = vector.shape_cast %24 : vector<2x1x48xf32> to vector<2x48xf32>
    %c0_12 = arith.constant 0 : index
    %c0_13 = arith.constant 0 : index
    %26 = vector.load %arg4[%c0_12, %c0_13] : memref<2x48xf32, #tpu.memory_space<vmem>>, vector<2x48xf32>
    tpu.vector_store %arg4[%c0_12, %c0_13], %25 {strides = array<i32>} : memref<2x48xf32, #tpu.memory_space<vmem>>, vector<2x48xf32>,
    return
  }
  func.func @transform_0(%arg0: i32) -> (i32, i32, i32) {
    %c0_i32 = arith.constant 0 : i32
    %c0_i32_0 = arith.constant 0 : i32
    %c0_i32_1 = arith.constant 0 : i32
    return %arg0, %c0_i32, %c0_i32_0 : i32, i32, i32
  }
  func.func @transform_1(%arg0: i32) -> (i32, i32) {
    %c0_i32 = arith.constant 0 : i32
    %c0_i32_0 = arith.constant 0 : i32
    %c0_i32_1 = arith.constant 0 : i32
    return %c0_i32, %c0_i32_0 : i32, i32
  }
  func.func @transform_2(%arg0: i32) -> (i32, i32) {
    %c0_i32 = arith.constant 0 : i32
    %c0_i32_0 = arith.constant 0 : i32
    %c0_i32_1 = arith.constant 0 : i32
    return %c0_i32, %c0_i32_0 : i32, i32
  }
  func.func @transform_3(%arg0: i32) -> (i32, i32) {
    %c0_i32 = arith.constant 0 : i32
    %c0_i32_0 = arith.constant 0 : i32
    return %arg0, %c0_i32 : i32, i32
  }
}

</mosaic_0001>

<bundles_post_ra>
// kernel: tpu_custom_call.1
= control target key start
LH: loop header
LB: loop body
LE: loop exit
PB: predicated region body
PF: predicated region fallthrough
CT: control target
= control target key end

     0   :  { %vm30_vm0 = vcmask 392192   ;;  %s544_s0 = inlined_call_operand.vmem [shape: f32[2,8,48], index: 0, kind: input, shape index: {}]   ;;  %s545_s1 = inlined_call_operand.vmem [shape: f32[48,32], index: 1, kind: input, shape index: {}]   ;;  %s546_s2 = inlined_call_operand.vmem [shape: f32[1,32], index: 2, kind: input, shape index: {}]   ;;  %s547_s3 = inlined_call_operand.hbm [shape: f32[2,48], index: 3, kind: output, shape index: {}]  }
   0x1   :  { %v17_v0 = vld [vmem:[%s545_s1] sm:$0xff]  ;;  %v18_v1 = vld [vmem:[%s545_s1 + $0x8] sm:$0xff]  ;;  %v19_v2 = vld [vmem:[%s545_s1 + $0x10] sm:$0xff] }
   0x2   :  { %v418_v3 = vpack.c.bf16 %v18_v1, %v17_v0  ;;  %v20_v4 = vld [vmem:[%s545_s1 + $0x18] sm:$0xff]  ;;  %v21_v5 = vld [vmem:[%s545_s1 + $0x20] sm:$0xff]  ;;  %v22_v7 = vld [vmem:[%s545_s1 + $0x28] sm:$0xff] }
   0x3   :  { %v422_v6 = vpack.c.bf16 %v20_v4, %v19_v2  ;;  %v511_v8 = vld [vmem:[%s544_s0] sm:$0xff] }
   0x4   :  { %8 = vsyncpa [#allocation3], 0  ;;  %419 = vmatprep.subr.bf16.mxu0 %v418_v3  ;;  %405 = vmatprep.mubr.msk.f32.mxu0 %vm30_vm0, %v511_v8  ;;  %v426_v9 = vpack.c.bf16 %v22_v7, %v21_v5  ;;  %v518_v10 = vld [vmem:[%s544_s0 + $0x8] sm:$0xff]  ;;  %v376_v11 = vld [vmem:[%s546_s2] ss:$0 sm:$0xff]  ;;  %vm114_vm1 = vcmask 261120   ;;  %v125_v20 = vlaneseq }
   0x5   :  { %421 = vmatpush3.bf16.msra.mxu0 %v418_v3  ;;  %vm135_vm2 = vcmask 1041409   ;;  %vm138_vm3 = vcmask 58368   ;;  %v466_v32 = vmov 0   ;;  %v467_v50 = vmov 0.0   ;;  %s469_s0 = smov [#allocation2]  }
   0x6   :  { %423 = vmatprep.subr.bf16.mxu0 %v422_v6  ;;  %v126_v21 = vand.u32 127, %v125_v20  ;;  %v128_v22 = vshrl.u32 %v125_v20, 7  ;;  %435 = vset.pattern.permute.xlu0 %v466_v32  ;;  %vm468_vm4 = vmmov 0   ;;  %vm202_vm5 = vcmask 64512   ;;  %s368_s2 = sshll.u32 %s469_s0, 4  ;;  %s369_s2 = int_to_ptr.vmem [resolvable:$true] %s368_s2 }
   0x7   :  { %434 = vset.pattern.permute.xlu1 %v466_v32  ;;  %408 = vmatprep.subr.mxu1 %v467_v50  ;;  %vm360_vm6 = vcmask 386048   ;;  %s442_s29 = scalar_lea.vmem %s369_s2, 32  ;;  %p447_p1 = scmp.lt.s32.totalorder %s369_s2, %s369_s2 }
   0x8   :  { %v129_v24 = vsub.s32 %v126_v21, %v128_v22  ;;  %v145_v33 = vsub.s32 0, %v128_v22  ;;  %v149_v34 = vsub.s32 1, %v128_v22  ;;  %409 = vmatpush3.msra.mxu1 %v511_v8  ;;  %410 = vmatprep.mubr.msk.f32.mxu1 %vm468_vm4, %v467_v50  ;;  %p443_p0 = scmp.ne.s32.totalorder %s369_s2, %s442_s29  ;;  %p448_p2 = scmp.lt.s32.totalorder %s442_s29, %s442_s29 }
   0x9   :  { %425 = vmatpush3.bf16.msra.mxu0 %v422_v6  ;;  %413 = vmatprep.subr.mxu1 %v467_v50 }
   0xa   :  { %427 = vmatprep.subr.bf16.mxu0 %v426_v9  ;;  %p449_p3 = por %p448_p2, %p447_p1 }
   0xc   :  { %p450_p4 = pnand %p449_p3, %p443_p0 }
   0xd   :  { %429 = vmatpush3.bf16.msra.mxu0 %v426_v9 }
  0x10   :  { %406 = vmatmul.mubr.msk.f32.vlgmr.msra.gmra.mrb[0].mxu0 %vm30_vm0, %v518_v10 }
  0xe3   :  { %v407_v12 = vpop.f32.mrb[0].mxu0 }
  0xe4   :  { %v103_v13 = vpop.f32.mrb[1].mxu0  ;;  %v109_v14 = vadd.f32 %v407_v12, %v376_v11 }
  0xe5   :  { %v104_v15 = vadd.f32 %v376_v11, %v103_v13 }
  0xe6   :  { %v113_v17 = vmax.f32 %v109_v14, 0.0 }
  0xe7   :  { %v112_v16 = vmax.f32 %v104_v15, 0.0 }
  0xe8   :  { %v118_v19 = vsel %vm114_vm1, %v113_v17, 0.0 }
  0xe9   :  { %v115_v18 = vsel %vm114_vm1, %v112_v16, 0.0 }
  0xea   :  { %116 = vadd.xlane.f32.xlu0 %v115_v18 }
  0xee   :  { %119 = vadd.xlane.f32.xlu0 %v118_v19 }
 0x177   :  { %v117_v23 = vpop.xlane.xlu0 %116 }
 0x178   :  { %v121_v25 = vmul.f32 0.028125, %v117_v23 }
 0x17a   :  { %v130_v28 = vrot.slane %v121_v25, %v129_v24 }
 0x17b   :  { %v120_v26 = vpop.xlane.xlu0 %119 }
 0x17c   :  { %v122_v27 = vmul.f32 0.028125, %v120_v26 }
 0x17e   :  { %v134_v29 = vrot.slane %v122_v27, %v129_v24 }
 0x180   :  { %v136_v30 = vsel %vm135_vm2, %v134_v29, %v130_v28 }
 0x181   :  { %v139_v31 = vsel %vm138_vm3, %v136_v30, -inf }
 0x182   :  { %140 = vmax.xlane.f32.xlu1 %v139_v31 }
 0x20f   :  { %v141_v35 = vpop.xlane.xlu1 %140 }
 0x210   :  { %v146_v36 = vrot.slane %v141_v35, %v145_v33  ;;  %v150_v37 = vrot.slane %v141_v35, %v149_v34 }
 0x212   :  { %v153_v38 = vsub.f32 %v121_v25, %v146_v36  ;;  %v154_v39 = vsub.f32 %v122_v27, %v150_v37 }
 0x214   :  { %v155_v40 = vmul.f32 1.442695, %v153_v38  ;;  %v157_v41 = vmul.f32 1.442695, %v154_v39 }
 0x216   :  { %436 = vpow2.f32 %v155_v40 }
 0x217   :  { %438 = vpow2.f32 %v157_v41 }
 0x220   :  { %v437_v42 = vpop.eup %436 }
 0x221   :  { %v439_v43 = vpop.eup %438  ;;  %162 = vperm.xlu1 %434, %v437_v42  }
 0x222   :  { %165 = vperm.xlu0 %435, %v439_v43  }
 0x2a0   :  { %v163_v44 = vpop.permute.xlu1 %162 }
 0x2a1   :  { %v166_v45 = vpop.permute.xlu0 %165  ;;  %v170_v46 = vrot.slane %v163_v44, %v129_v24 }
 0x2a2   :  { %v174_v47 = vrot.slane %v166_v45, %v129_v24 }
 0x2a4   :  { %v175_v48 = vsel %vm135_vm2, %v174_v47, %v170_v46 }
 0x2a5   :  { %v177_v49 = vsel %vm138_vm3, %v175_v48, 0.0 }
 0x2a6   :  { %178 = vadd.xlane.f32.xlu1 %v177_v49 }
 0x333   :  { %v179_v51 = vpop.xlane.xlu1 %178 }
 0x334   :  { %440 = vrcp.f32 %v179_v51 }
 0x33e   :  { %v441_v52 = vpop.eup %440 }
 0x33f   :  { %v185_v53 = vrot.slane %v441_v52, %v145_v33  ;;  %v189_v55 = vrot.slane %v441_v52, %v149_v34 }
 0x341   :  { %v192_v54 = vmul.f32 %v437_v42, %v185_v53  ;;  %v193_v56 = vmul.f32 %v439_v43, %v189_v55 }
 0x343   :  { %196 = vperm.xlu0 %435, %v192_v54  }
 0x347   :  { %277 = vperm.xlu0 %435, %v193_v56  }
 0x3c2   :  { %v197_v57 = vpop.permute.xlu0 %196 }
 0x3c3   :  { %v201_v58 = vrot.slane %v197_v57, %v129_v24 }
 0x3c5   :  { %411 = vmatmul.mubr.msk.f32.vlgmr.msra.gmra.mrb[0].mxu1 %vm202_vm5, %v201_v58 }
 0x3c6   :  { %414 = vmatpush3.msra.mxu1 %v518_v10  ;;  %v278_v59 = vpop.permute.xlu0 %277  ;;  %415 = vmatprep.mubr.msk.f32.mxu1 %vm468_vm4, %v467_v50 }
 0x3c7   :  { %v282_v60 = vrot.slane %v278_v59, %v129_v24 }
 0x3c9   :  { %416 = vmatmul.mubr.msk.f32.vlgmr.msra.gmra.mrb[2].mxu1 %vm202_vm5, %v282_v60 }
 0x498   :  { %v271_v61 = vpop.f32.mrb[0].mxu1 }
 0x499   :  { %v412_v62 = vpop.f32.mrb[1].mxu1 }
 0x49c   :  { %v351_v63 = vpop.f32.mrb[2].mxu1 }
 0x49d   :  { %v357_v0 = vrot.slane %v351_v63, 7  ;;  %v417_v1 = vpop.f32.mrb[3].mxu1 }
 0x49f   :  { %v358_v2 = vsel %vm135_vm2, %v357_v0, %v271_v61 }
 0x4a0   :  { %361 = vst.msk [vmem:[#allocation2] sm:$0x3] %vm360_vm6, %v358_v2 }
 0x4a1   :  { %453 = shalt.err (!%p450_p4)
}
 0x4a2   :  { %s454_s5 = scalar_lea.hbm %s547_s3, 32 }
 0x4a3   :  { %p455_p5 = scmp.ne.s32.totalorder %s547_s3, %s454_s5  ;;  %p458_p6 = scmp.lt.u32.totalorder %s454_s5, %s547_s3 }
 0x4a5   :  { %p460_p7 = pnand %p458_p6, %p455_p5 }
 0x4a7   :  { %463 = shalt.err (!%p460_p7)
}
 0x4a8   :  { %371 = dma.vmem_to_hbm [thread:$0]  %s369_s2, 32, %s547_s3, [#allocation3]  }
 0x4a9   :  { %464 = dma.done.wait [#allocation3], 32  }
 0x4aa   :  { %465 = vsyncadd [#allocation3], 4294967264 }
 0x4ab   :  { %375 = vsyncpa [#allocation3], 1 }

</bundles_post_ra>
